<compile_context>
chip_gen: v7x
topology: tpu7x:2x2x1
jax: 0.10.0
libtpu: 0.0.40
codegen_flags: <defaults>
</compile_context>

<pallas_src>
import functools

import jax
import jax.numpy as jnp
from jax.experimental import pallas as pl
from jax.experimental.pallas import tpu as pltpu


# --------------------------------------------------------------------------- #
# Kernels
# --------------------------------------------------------------------------- #
def _rotary_kernel(x_ref, cs_ref, o_ref):
    """Unpacked path: the lane dim of the block IS the model dim (D >= 128)."""
    x = x_ref[...].astype(jnp.float32)              # (ts, D)
    cos = cs_ref[0:1, :]                            # (1, D) f32
    sin_signed = cs_ref[1:2, :]                     # (1, D) f32  (sign folded)
    t = x * cos + jnp.abs(x) * sin_signed
    r = jnp.sum(t, axis=-1, keepdims=True)          # (ts, 1) per-row reduction
    o_ref[...] = (x * r).astype(o_ref.dtype)


def _rotary_kernel_packed(x_ref, cs_ref, b_ref, o_ref):
    """Lane-dense path: `pack` original rows of width Dpad per 128-lane row.

    b_ref is a block-diagonal 0/1 matrix (128, 128) with Dpad-wide all-ones
    blocks, so t @ B performs the per-original-row sum AND broadcasts it back
    across that row's lanes in one MXU op (no cross-lane VPU work, no
    in-kernel reshapes).  HIGHEST keeps the f32 sum exact (B is exactly 0/1);
    Mosaic's dot lowering supports only DEFAULT/HIGHEST, and the matmul stays
    hidden under the tile's HBM DMA on all of v5e/v6e/v7x.
    """
    x = x_ref[...].astype(jnp.float32)              # (ts, 128)
    cos = cs_ref[0:1, :]
    sin_signed = cs_ref[1:2, :]
    t = x * cos + jnp.abs(x) * sin_signed
    r = jnp.dot(t, b_ref[...],
                preferred_element_type=jnp.float32,
                precision=jax.lax.Precision.HIGHEST)
    o_ref[...] = (x * r).astype(o_ref.dtype)


# --------------------------------------------------------------------------- #
# Wrapper-side constants (cached per (D, Dpad, pack))
# --------------------------------------------------------------------------- #
@functools.lru_cache(maxsize=None)
def _rotary_constants(D: int, Dpad: int, pack: int):
    d_idx = jnp.arange(D, dtype=jnp.float32)
    theta = jnp.power(jnp.float32(10000.0), -2.0 * d_idx / jnp.float32(D))
    cos = jnp.cos(theta)
    sign = jnp.where(jnp.arange(D) % 2 == 0, -1.0, 1.0).astype(jnp.float32)
    sin_signed = sign * jnp.sin(theta)              # sign folded wrapper-side
    if Dpad > D:                                    # padded lanes carry x == 0
        cos = jnp.pad(cos, (0, Dpad - D))
        sin_signed = jnp.pad(sin_signed, (0, Dpad - D))
    cs = jnp.stack([jnp.tile(cos, pack), jnp.tile(sin_signed, pack)])  # (2, Dp)
    b_mat = None
    if pack > 1:
        b_mat = jnp.kron(jnp.eye(pack, dtype=jnp.float32),
                         jnp.ones((Dpad, Dpad), dtype=jnp.float32))    # (Dp, Dp)
    return cs, b_mat


# --------------------------------------------------------------------------- #
# Pure-JAX forward (tiny-shape fast path + reference)
# --------------------------------------------------------------------------- #
def _rotary_xla(x2d):
    D = x2d.shape[-1]
    xf = x2d.astype(jnp.float32)
    sign = jnp.where(jnp.arange(D) % 2 == 0, -1.0, 1.0).astype(jnp.float32)
    theta = jnp.power(jnp.float32(10000.0),
                      -2.0 * jnp.arange(D, dtype=jnp.float32) / jnp.float32(D))
    r = jnp.sum(xf * jnp.cos(theta) + sign * jnp.abs(xf) * jnp.sin(theta),
                axis=-1, keepdims=True)
    return (xf * r).astype(x2d.dtype)


def _squeeze_like_torch(x):
    if x.ndim == 3 and x.shape[0] == 1:
        return x[0]
    if x.ndim == 2:
        return x
    return jnp.squeeze(x)


def rotary_reference(x):
    """Pure-JAX reference mirroring the PyTorch forward exactly."""
    return _rotary_xla(_squeeze_like_torch(x))


# --------------------------------------------------------------------------- #
# Public forward
# --------------------------------------------------------------------------- #
def rotary_forward(x, *, tile_s=4096, min_pallas_elems=64 * 1024):
    """x: (1, S, D) or (S, D). Returns (S, D) in x.dtype (matches torch forward)."""
    x2d = _squeeze_like_torch(x)
    assert x2d.ndim == 2, "Rotary.forward expects a 2-D tensor after squeeze"
    S, D = x2d.shape
    out_dtype = x2d.dtype
    itemsize = jnp.dtype(out_dtype).itemsize

    # Tiny-shape fast path: the production shape (1, 8, 32) moves ~1 KiB, so
    # Pallas custom-call + grid overhead dwarfs the data movement; XLA fuses
    # the elementwise + row-reduce into a single pass instead.
    if S * D < min_pallas_elems:
        return _rotary_xla(x2d)

    # ---- lane packing / padding: make the kernel's lane dim a multiple of 128
    if D < 128:
        Dpad = 1 << (D - 1).bit_length() if D > 1 else 1   # next pow2 >= D
        pack = 128 // Dpad
    else:
        Dpad, pack = D, 1
    Dp = Dpad * pack                                 # lane width seen by kernel

    xw = x2d
    if Dpad != D:                                    # lane pad (non-pow2 D<128)
        xw = jnp.pad(xw, ((0, 0), (0, Dpad - D)))
    Srows = S
    if pack > 1 and S % pack:                        # row pad so rows pack evenly
        Srows = S + (-S) % pack
        xw = jnp.pad(xw, ((0, Srows - S), (0, 0)))
    Sp = Srows // pack
    x_in = xw.reshape(Sp, Dp)                        # row-major: pure relabel

    cs, b_mat = _rotary_constants(D, Dpad, pack)

    # ---- row-tile sizing (amortize ~0.35us per-grid-step overhead) ----------
    sublane = max(8, 32 // itemsize)                 # 8 f32 / 16 bf16 / 32 i8
    vmem_io_budget = 16 * 1024 * 1024                # under 32 MiB scoped limit
    bytes_per_row = Dp * (4 * itemsize + 3 * 4)      # 4 I/O bufs + f32 temps
    max_ts = max(sublane, vmem_io_budget // bytes_per_row)
    ts = max(sublane, (min(tile_s, max_ts) // sublane) * sublane)

    if Sp <= ts:
        total_bytes = Sp * Dp * itemsize
        if total_bytes >= (1 << 20) and Sp >= 2 * sublane:
            # Enough work to amortize a second grid step: balanced 2-block
            # split so the v7x megacore can place one block per TensorCore.
            half = (Sp + 1) // 2
            ts = ((half + sublane - 1) // sublane) * sublane
        else:
            # Single full-extent block: cheapest on single-TC v5e/v6e and for
            # small inputs on v7x (per-step overhead would dominate).
            ts = Sp
    grid = (pl.cdiv(Sp, ts),)
    # NOTE: when Sp % ts != 0 the last block reads padded rows; r_theta is
    # strictly per-row, so padded rows never contaminate valid ones, and
    # Pallas masks the out-of-bounds writeback.

    x_spec = pl.BlockSpec((ts, Dp), lambda i: (i, 0))
    const_spec = pl.BlockSpec((2, Dp), lambda i: (0, 0))
    out_spec = pl.BlockSpec((ts, Dp), lambda i: (i, 0))

    if pack > 1:
        kernel = _rotary_kernel_packed
        in_specs = [x_spec, const_spec, pl.BlockSpec((Dp, Dp), lambda i: (0, 0))]
        args = (x_in, cs, b_mat)
    else:
        kernel = _rotary_kernel
        in_specs = [x_spec, const_spec]
        args = (x_in, cs)

    out = pl.pallas_call(
        kernel,
        out_shape=jax.ShapeDtypeStruct((Sp, Dp), out_dtype),
        grid_spec=pltpu.PrefetchScalarGridSpec(
            num_scalar_prefetch=0,
            grid=grid,
            in_specs=in_specs,
            out_specs=out_spec,
        ),
        compiler_params=pltpu.CompilerParams(
            dimension_semantics=("parallel",),
            vmem_limit_bytes=32 * 1024 * 1024,
        ),
    )(*args)

    out = out.reshape(Srows, Dpad)
    if Srows != S or Dpad != D:
        out = out[:S, :D]
    return out


# --------------------------------------------------------------------------- #
# Self-test
# --------------------------------------------------------------------------- #
if __name__ == "__main__":
    key = jax.random.PRNGKey(0)
    ks = jax.random.split(key, 6)

    def check(x, ref_tol=(1e-5, 1e-5), **kw):
        out = jax.block_until_ready(rotary_forward(x, **kw))
        ref = rotary_reference(x)
        assert out.shape == ref.shape, (out.shape, ref.shape)
        atol, rtol = ref_tol
        ok = jnp.allclose(out.astype(jnp.float32), ref.astype(jnp.float32),
                          atol=atol, rtol=rtol)
        assert bool(ok), f"mismatch for shape {x.shape} dtype {x.dtype}"
        return out

    # Production shape (batch=1, seq=8, d_model=32):
    #   default -> tiny-shape XLA fast path; forced -> packed Pallas kernel.
    x0 = jax.random.normal(ks[0], (1, 8, 32), dtype=jnp.float32)
    check(x0)
    check(x0, min_pallas_elems=0)

    # Packed path (pack=4), multi-block pipeline (grid = 4).
    x1 = jax.random.normal(ks[1], (1, 1024, 32), dtype=jnp.float32)
    check(x1, tile_s=64, min_pallas_elems=0)

    # Unpacked path (D=128) with a padded tail block (136 = 64 + 64 + 8).
    x2 = jax.random.normal(ks[2], (1, 136, 128), dtype=jnp.float32)
    check(x2, tile_s=64, min_pallas_elems=0)

    # bf16 input through the packed path (pack=2), 16-row sublane rounding.
    x3 = jax.random.normal(ks[3], (1, 256, 64), dtype=jnp.bfloat16)
    check(x3, min_pallas_elems=0, ref_tol=(5e-2, 5e-2))

    # Row padding: S not a multiple of pack (10 rows packed 4-per-lane-row).
    x4 = jax.random.normal(ks[4], (1, 10, 32), dtype=jnp.float32)
    check(x4, min_pallas_elems=0)

    # Lane padding: non-power-of-two D < 128 (24 -> 32, pack=4), lane-dense.
    x5 = jax.random.normal(ks[5], (1, 64, 24), dtype=jnp.float32)
    check(x5, min_pallas_elems=0)

    print("KERNEL_OK")
</pallas_src>

<mosaic_0001>
module attributes {stable_mosaic.version = 11 : i64} {
  func.func @_rotary_kernel_packed(%arg0: i32, %arg1: memref<2x128xf32, #tpu.memory_space<vmem>>, %arg2: memref<2x128xf32, #tpu.memory_space<vmem>>, %arg3: memref<128x128xf32, #tpu.memory_space<vmem>>, %arg4: memref<2x128xf32, #tpu.memory_space<vmem>>) attributes {dimension_semantics = [#tpu.dimension_semantics<parallel>], iteration_bounds = array<i64: 1>, scalar_prefetch = 0 : i64, scratch_operands = 0 : i64, tpu.core_type = #tpu.core_type<tc>, window_params = [{transform_indices = @transform_0, window_bounds = array<i64: 2, 128>}, {pipeline_mode = #tpu.pipeline_mode<synchronous>, transform_indices = @transform_1, window_bounds = array<i64: 2, 128>}, {pipeline_mode = #tpu.pipeline_mode<synchronous>, transform_indices = @transform_2, window_bounds = array<i64: 128, 128>}, {transform_indices = @transform_3, window_bounds = array<i64: 2, 128>}]} {
    %c0 = arith.constant 0 : index
    %c0_0 = arith.constant 0 : index
    %0 = vector.load %arg1[%c0, %c0_0] : memref<2x128xf32, #tpu.memory_space<vmem>>, vector<2x128xf32>
    %c0_1 = arith.constant 0 : index
    %c0_2 = arith.constant 0 : index
    %1 = vector.load %arg2[%c0_1, %c0_2] : memref<2x128xf32, #tpu.memory_space<vmem>>, vector<1x128xf32>
    %c1 = arith.constant 1 : index
    %c0_3 = arith.constant 0 : index
    %2 = vector.load %arg2[%c1, %c0_3] : memref<2x128xf32, #tpu.memory_space<vmem>>, vector<1x128xf32>
    %3 = vector.broadcast %1 : vector<1x128xf32> to vector<2x128xf32>
    %4 = arith.mulf %0, %3 : vector<2x128xf32>
    %5 = math.absf %0 : vector<2x128xf32>
    %6 = vector.broadcast %2 : vector<1x128xf32> to vector<2x128xf32>
    %7 = arith.mulf %5, %6 : vector<2x128xf32>
    %8 = arith.addf %4, %7 : vector<2x128xf32>
    %c0_4 = arith.constant 0 : index
    %c0_5 = arith.constant 0 : index
    %9 = vector.load %arg3[%c0_4, %c0_5] : memref<128x128xf32, #tpu.memory_space<vmem>>, vector<128x128xf32>
    %cst = arith.constant dense<0.000000e+00> : vector<2x128xf32>
    %10 = tpu.matmul %8, %9, %cst {dimension_numbers = #tpu.dot_dimension_numbers<[1], [0], [0], [1], [0, 0, 1, 1], [], []>, precision = #tpu.contract_precision<fp32>} : vector<2x128xf32>, vector<128x128xf32>, vector<2x128xf32> -> vector<2x128xf32>
    %11 = arith.mulf %0, %10 : vector<2x128xf32>
    %c0_6 = arith.constant 0 : index
    %c0_7 = arith.constant 0 : index
    %12 = vector.load %arg4[%c0_6, %c0_7] : memref<2x128xf32, #tpu.memory_space<vmem>>, vector<2x128xf32>
    tpu.vector_store %arg4[%c0_6, %c0_7], %11 {strides = array<i32>} : memref<2x128xf32, #tpu.memory_space<vmem>>, vector<2x128xf32>,
    return
  }
  func.func @transform_0(%arg0: i32) -> (i32, i32) {
    %c0_i32 = arith.constant 0 : i32
    %c0_i32_0 = arith.constant 0 : i32
    return %arg0, %c0_i32 : i32, i32
  }
  func.func @transform_1(%arg0: i32) -> (i32, i32) {
    %c0_i32 = arith.constant 0 : i32
    %c0_i32_0 = arith.constant 0 : i32
    %c0_i32_1 = arith.constant 0 : i32
    return %c0_i32, %c0_i32_0 : i32, i32
  }
  func.func @transform_2(%arg0: i32) -> (i32, i32) {
    %c0_i32 = arith.constant 0 : i32
    %c0_i32_0 = arith.constant 0 : i32
    %c0_i32_1 = arith.constant 0 : i32
    return %c0_i32, %c0_i32_0 : i32, i32
  }
  func.func @transform_3(%arg0: i32) -> (i32, i32) {
    %c0_i32 = arith.constant 0 : i32
    %c0_i32_0 = arith.constant 0 : i32
    return %arg0, %c0_i32 : i32, i32
  }
}

</mosaic_0001>

<bundles_post_ra>
// kernel: tpu_custom_call.1
= control target key start
LH: loop header
LB: loop body
LE: loop exit
PB: predicated region body
PF: predicated region fallthrough
CT: control target
= control target key end

     0   :  { %8 = vsyncpa [#allocation3], 0  ;;  %s1623_s0 = inlined_call_operand.hbm [shape: f32[2,128], index: 0, kind: input, shape index: {}]   ;;  %s1624_s1 = inlined_call_operand.vmem [shape: f32[2,128], index: 1, kind: input, shape index: {}]   ;;  %s1625_s2 = inlined_call_operand.hbm [shape: f32[128,128], index: 2, kind: input, shape index: {}]   ;;  %s1626_s3 = inlined_call_operand.hbm [shape: f32[2,128], index: 3, kind: output, shape index: {}]  }
   0x1   :  { %9 = vsyncpa [#allocation6], 0 }
   0x2   :  { %10 = vsyncpa [#allocation4], 0  ;;  %s1278_s12 = smov [#allocation2]   ;;  %s1279_s14 = smov [#allocation5]  }
   0x3   :  { %s17_s13 = sshll.u32 %s1278_s12, 4  ;;  %s28_s15 = sshll.u32 %s1279_s14, 4  ;;  %s18_s13 = int_to_ptr.vmem [resolvable:$true] %s17_s13  ;;  %s1306_s15 = int_to_ptr.vmem [resolvable:$true] %s28_s15 }
   0x4   :  { %s1206_s18 = scalar_lea.hbm %s1623_s0, 32 }
   0x5   :  { %p1207_p0 = scmp.ne.s32.totalorder %s1623_s0, %s1206_s18  ;;  %p1210_p1 = scmp.lt.u32.totalorder %s1206_s18, %s1623_s0 }
   0x7   :  { %p1212_p2 = pnand %p1210_p1, %p1207_p0 }
   0x9   :  { %1215 = shalt.err (!%p1212_p2)
}
   0xa   :  { %s1216_s23 = scalar_lea.vmem %s18_s13, 32  ;;  %p1221_p4 = scmp.lt.s32.totalorder %s18_s13, %s18_s13 }
   0xb   :  { %p1217_p3 = scmp.ne.s32.totalorder %s18_s13, %s1216_s23  ;;  %p1222_p5 = scmp.lt.s32.totalorder %s1216_s23, %s1216_s23 }
   0xd   :  { %p1223_p6 = por %p1222_p5, %p1221_p4 }
   0xf   :  { %p1224_p7 = pnand %p1223_p6, %p1217_p3 }
  0x11   :  { %1227 = shalt.err (!%p1224_p7)
}
  0x12   :  { %20 = dma.hbm_to_vmem [thread:$0]  %s1623_s0, 32, %s18_s13, [#allocation3]  }
  0x13   :  { %s1228_s28 = scalar_lea.hbm %s1625_s2, 2048 }
  0x14   :  { %p1229_p8 = scmp.ne.s32.totalorder %s1625_s2, %s1228_s28  ;;  %p1232_p9 = scmp.lt.u32.totalorder %s1228_s28, %s1625_s2 }
  0x16   :  { %p1234_p10 = pnand %p1232_p9, %p1229_p8 }
  0x18   :  { %1237 = shalt.err (!%p1234_p10)
}
  0x19   :  { %s1238_s6 = scalar_lea.vmem %s1306_s15, 2048  ;;  %p1243_p12 = scmp.lt.s32.totalorder %s1306_s15, %s1306_s15 }
  0x1a   :  { %p1239_p11 = scmp.ne.s32.totalorder %s1306_s15, %s1238_s6  ;;  %p1244_p13 = scmp.lt.s32.totalorder %s1238_s6, %s1238_s6 }
  0x1c   :  { %p1245_p0 = por %p1244_p13, %p1243_p12 }
  0x1e   :  { %p1246_p1 = pnand %p1245_p0, %p1239_p11 }
  0x20   :  { %1249 = shalt.err (!%p1246_p1)
}
  0x21   :  { %s1280_s0 = smov 128   ;;  %s1281_s7 = smov 8  }
  0x22   :  { %34 = dma.hbm_to_vmem [thread:$0]  %s1625_s2, 2048, %s1306_s15, [#allocation6], %s1280_s0, %s1280_s0, %s1281_s7  }
  0x23   :  { %1272 = dma.done.wait [#allocation3], 32  }
  0x24   :  { %1273 = vsyncadd [#allocation3], 4294967264 }
  0x25   :  { %1274 = dma.done.wait [#allocation6], 2048  }
  0x26   :  { %1275 = vsyncadd [#allocation6], 4294965248  ;;  %v1282_v0 = vmov 0.0|0.0   ;;  %vm1283_vm0 = vmmov 0   ;;  %v1284_v1 = vmov 0.0   ;;  %v56_v2 = vld [vmem:[#allocation5] sm:$0xff] }
  0x27   :  { %1045 = vmatprep.subr.bf16.mxu1 %v1282_v0  ;;  %1117 = vmatprep.subr.bf16.mxu0 %v1282_v0  ;;  %v57_v3 = vld [vmem:[#allocation5 + $0x8] sm:$0xff]  ;;  %v58_v4 = vld [vmem:[#allocation5 + $0x10] sm:$0xff]  ;;  %v73_v5 = vand.u32 4294901760, %v56_v2  ;;  %v59_v7 = vld [vmem:[#allocation5 + $0x18] sm:$0xff] }
  0x28   :  { %867 = vmatprep.mubr.msk.f32.mxu1 %vm1283_vm0, %v1284_v1  ;;  %972 = vmatprep.mubr.msk.f32.mxu0 %vm1283_vm0, %v1284_v1  ;;  %v76_v6 = vand.u32 4294901760, %v57_v3  ;;  %v79_v8 = vand.u32 4294901760, %v58_v4  ;;  %v82_v9 = vand.u32 4294901760, %v59_v7  ;;  %v1343_v10 = vld [vmem:[#allocation5 + $0x20] sm:$0xff]  ;;  %v1345_v11 = vld [vmem:[#allocation5 + $0x28] sm:$0xff]  ;;  %v1357_v16 = vld [vmem:[#allocation5 + $0x30] sm:$0xff] }
  0x29   :  { %v85_v14 = vand.u32 4294901760, %v1343_v10  ;;  %v88_v15 = vand.u32 4294901760, %v1345_v11  ;;  %v1359_v17 = vld [vmem:[#allocation5 + $0x38] sm:$0xff]  ;;  %v91_v21 = vand.u32 4294901760, %v1357_v16  ;;  %v1377_v24 = vld [vmem:[#allocation5 + $0x40] sm:$0xff]  ;;  %v1379_v25 = vld [vmem:[#allocation5 + $0x48] sm:$0xff]  ;;  %v1395_v35 = vsub.f32 %v56_v2, %v73_v5 }
  0x2a   :  { %v1347_v12 = vpack.c.bf16 %v76_v6, %v73_v5  ;;  %v1351_v13 = vpack.c.bf16 %v82_v9, %v79_v8  ;;  %v1361_v18 = vld [vmem:[#allocation2] sm:$0x3]  ;;  %v94_v22 = vand.u32 4294901760, %v1359_v17  ;;  %v97_v30 = vand.u32 4294901760, %v1377_v24  ;;  %v1391_v32 = vld [vmem:[#allocation5 + $0x50] sm:$0xff]  ;;  %v1409_v41 = vld [vmem:[#allocation5 + $0x60] sm:$0xff] }
  0x2b   :  { %v731_v19 = vld [vmem:[%s1624_s1] ss:$0 sm:$0xff]  ;;  %v1368_v20 = vpack.c.bf16 %v88_v15, %v85_v14  ;;  %v732_v23 = vld [vmem:[%s1624_s1 + $0x1] ss:$0 sm:$0xff]  ;;  %v49_v27 = vand.u32 2147483647, %v1361_v18  ;;  %v1397_v36 = vsub.f32 %v57_v3, %v76_v6  ;;  %v1414_v44 = vsub.f32 %v58_v4, %v79_v8 }
  0x2c   :  { %1047 = vmatpush3.bf16.msra.mxu1 %v1347_v12  ;;  %1119 = vmatpush3.bf16.msra.mxu0 %v1347_v12  ;;  %v48_v26 = vmul.f32 %v731_v19, %v1361_v18  ;;  %v1385_v29 = vpack.c.bf16 %v94_v22, %v91_v21  ;;  %v100_v31 = vand.u32 4294901760, %v1379_v25  ;;  %v1393_v33 = vld [vmem:[#allocation5 + $0x58] sm:$0xff]  ;;  %v103_v39 = vand.u32 4294901760, %v1391_v32  ;;  %v1411_v42 = vld [vmem:[#allocation5 + $0x68] sm:$0xff]  ;;  %v1432_v51 = vld [vmem:[#allocation5 + $0x70] sm:$0xff]  ;;  %s1285_s1 = smov [#allocation7]  }
  0x2d   :  { %1048 = vmatprep.subr.bf16.mxu1 %v1282_v0  ;;  %1120 = vmatprep.subr.bf16.mxu0 %v1282_v0  ;;  %v54_v28 = vmul.f32 %v732_v23, %v49_v27  ;;  %v106_v40 = vand.u32 4294901760, %v1393_v33  ;;  %v166_v43 = vand.u32 4294901760, %v1395_v35  ;;  %v173_v46 = vand.u32 4294901760, %v1397_v36  ;;  %v1436_v52 = vld [vmem:[#allocation5 + $0x78] sm:$0xff]  ;;  %s721_s13 = sshll.u32 %s1285_s1, 4  ;;  %s722_s13 = int_to_ptr.vmem [resolvable:$true] %s721_s13 }
  0x2e   :  { %v1403_v38 = vpack.c.bf16 %v100_v31, %v97_v30  ;;  %v1420_v47 = vsub.f32 %v59_v7, %v82_v9  ;;  %v109_v49 = vand.u32 4294901760, %v1409_v41  ;;  %v112_v50 = vand.u32 4294901760, %v1411_v42  ;;  %s1250_s14 = scalar_lea.vmem %s722_s13, 32  ;;  %p1255_p3 = scmp.lt.s32.totalorder %s722_s13, %s722_s13 }
  0x2f   :  { %v55_v34 = vadd.f32 %v54_v28, %v48_v26  ;;  %v1428_v48 = vpack.c.bf16 %v106_v40, %v103_v39  ;;  %v1439_v53 = vsub.f32 %v1343_v10, %v85_v14  ;;  %v167_v54 = vsub.f32 %v1395_v35, %v166_v43  ;;  %p1251_p2 = scmp.ne.s32.totalorder %s722_s13, %s1250_s14  ;;  %p1256_p4 = scmp.lt.s32.totalorder %s1250_s14, %s1250_s14 }
  0x30   :  { %1050 = vmatpush3.bf16.msra.mxu1 %v1351_v13  ;;  %1122 = vmatpush3.bf16.msra.mxu0 %v1351_v13  ;;  %v1443_v55 = vsub.f32 %v1345_v11, %v88_v15  ;;  %v115_v56 = vand.u32 4294901760, %v1432_v51  ;;  %v174_v58 = vsub.f32 %v1397_v36, %v173_v46  ;;  %v1454_v59 = vpack.c.bf16 %v112_v50, %v109_v49 }
  0x31   :  { %1051 = vmatprep.subr.bf16.mxu1 %v1282_v0  ;;  %1123 = vmatprep.subr.bf16.mxu0 %v1282_v0  ;;  %v1399_v37 = vand.u32 4294901760, %v55_v34  ;;  %v118_v60 = vand.u32 4294901760, %v1436_v52  ;;  %v180_v61 = vand.u32 4294901760, %v1414_v44  ;;  %v187_v62 = vand.u32 4294901760, %v1420_v47  ;;  %p1257_p5 = por %p1256_p4, %p1255_p3 }
  0x32   :  { %v1462_v63 = vsub.f32 %v1357_v16, %v91_v21  ;;  %v1465_v2 = vsub.f32 %v1359_v17, %v94_v22  ;;  %v168_v3 = vand.u32 4294901760, %v167_v54  ;;  %v175_v5 = vand.u32 4294901760, %v174_v58 }
  0x33   :  { %v1417_v45 = vsub.f32 %v55_v34, %v1399_v37  ;;  %v194_v6 = vand.u32 4294901760, %v1439_v53  ;;  %v201_v7 = vand.u32 4294901760, %v1443_v55  ;;  %v1476_v8 = vpack.c.bf16 %v118_v60, %v115_v56  ;;  %p1258_p6 = pnand %p1257_p5, %p1251_p2 }
  0x34   :  { %1053 = vmatpush3.bf16.msra.mxu1 %v1368_v20  ;;  %1125 = vmatpush3.bf16.msra.mxu0 %v1368_v20  ;;  %v181_v9 = vsub.f32 %v1414_v44, %v180_v61  ;;  %v188_v10 = vsub.f32 %v1420_v47, %v187_v62  ;;  %v1483_v11 = vsub.f32 %v1377_v24, %v97_v30  ;;  %v208_v26 = vand.u32 4294901760, %v1462_v63 }
  0x35   :  { %1054 = vmatprep.subr.bf16.mxu1 %v1282_v0  ;;  %1126 = vmatprep.subr.bf16.mxu0 %v1282_v0  ;;  %v155_v57 = vand.u32 4294901760, %v1417_v45  ;;  %v1486_v14 = vsub.f32 %v1379_v25, %v100_v31  ;;  %v1142_v15 = vpack.c.bf16 %v173_v46, %v166_v43  ;;  %v1070_v17 = vpack.c.bf16 %v175_v5, %v168_v3 }
  0x36   :  { %v195_v19 = vsub.f32 %v1439_v53, %v194_v6  ;;  %v202_v21 = vsub.f32 %v1443_v55, %v201_v7  ;;  %v182_v22 = vand.u32 4294901760, %v181_v9  ;;  %v189_v23 = vand.u32 4294901760, %v188_v10 }
  0x37   :  { %v156_v4 = vsub.f32 %v1417_v45, %v155_v57  ;;  %v215_v24 = vand.u32 4294901760, %v1465_v2  ;;  %v1499_v25 = vsub.f32 %v1391_v32, %v103_v39  ;;  %v1504_v27 = vsub.f32 %v1393_v33, %v106_v40 }
  0x38   :  { %1056 = vmatpush3.bf16.msra.mxu1 %v1385_v29  ;;  %1128 = vmatpush3.bf16.msra.mxu0 %v1385_v29  ;;  %v1145_v28 = vpack.c.bf16 %v187_v62, %v180_v61  ;;  %v196_v30 = vand.u32 4294901760, %v195_v19  ;;  %v203_v31 = vand.u32 4294901760, %v202_v21  ;;  %v222_v34 = vand.u32 4294901760, %v1483_v11 }
  0x39   :  { %1057 = vmatprep.subr.bf16.mxu1 %v1282_v0  ;;  %1129 = vmatprep.subr.bf16.mxu0 %v1282_v0  ;;  %v157_v16 = vand.u32 4294901760, %v156_v4  ;;  %v229_v43 = vand.u32 4294901760, %v1486_v14  ;;  %v1073_v46 = vpack.c.bf16 %v189_v23, %v182_v22  ;;  %v209_v32 = vsub.f32 %v1462_v63, %v208_v26 }
  0x3a   :  { %v216_v39 = vsub.f32 %v1465_v2, %v215_v24  ;;  %v1515_v33 = vsub.f32 %v1409_v41, %v109_v49  ;;  %v1520_v40 = vsub.f32 %v1411_v42, %v112_v50  ;;  %v1076_v54 = vpack.c.bf16 %v203_v31, %v196_v30 }
  0x3b   :  { %v223_v58 = vsub.f32 %v1483_v11, %v222_v34  ;;  %v230_v61 = vsub.f32 %v1486_v14, %v229_v43  ;;  %v210_v41 = vand.u32 4294901760, %v209_v32  ;;  %v236_v62 = vand.u32 4294901760, %v1499_v25 }
  0x3c   :  { %1059 = vmatpush3.bf16.msra.mxu1 %v1403_v38  ;;  %1131 = vmatpush3.bf16.msra.mxu0 %v1403_v38  ;;  %v217_v49 = vand.u32 4294901760, %v216_v39  ;;  %v243_v42 = vand.u32 4294901760, %v1504_v27  ;;  %v1535_v50 = vsub.f32 %v1432_v51, %v115_v56  ;;  %v1540_v3 = vsub.f32 %v1436_v52, %v118_v60 }
  0x3d   :  { %1060 = vmatprep.subr.bf16.mxu1 %v1282_v0  ;;  %1132 = vmatprep.subr.bf16.mxu0 %v1282_v0  ;;  %v1151_v4 = vpack.c.bf16 %v215_v24, %v208_v26  ;;  %v224_v5 = vand.u32 4294901760, %v223_v58  ;;  %v237_v10 = vsub.f32 %v1499_v25, %v236_v62  ;;  %v257_v51 = vand.u32 4294901760, %v1520_v40 }
  0x3e   :  { %v1079_v9 = vpack.c.bf16 %v217_v49, %v210_v41  ;;  %v1154_v56 = vpack.c.bf16 %v229_v43, %v222_v34  ;;  %v271_v22 = vand.u32 4294901760, %v1540_v3  ;;  %v1157_v23 = vpack.c.bf16 %v243_v42, %v236_v62 }
  0x3f   :  { %v258_v21 = vsub.f32 %v1520_v40, %v257_v51  ;;  %v1097_v58 = vpack.c.bf16 %v1420_v47, %v1414_v44 }
  0x40   :  { %1062 = vmatpush3.bf16.msra.mxu1 %v1428_v48  ;;  %1134 = vmatpush3.bf16.msra.mxu0 %v1428_v48  ;;  %v272_v31 = vsub.f32 %v1540_v3, %v271_v22 }
  0x41   :  { %1063 = vmatprep.subr.bf16.mxu1 %v1282_v0  ;;  %1135 = vmatprep.subr.bf16.mxu0 %v1282_v0 }
  0x42   :  { %v273_v32 = vand.u32 4294901760, %v272_v31 }
  0x44   :  { %1065 = vmatpush3.bf16.msra.mxu1 %v1454_v59  ;;  %1137 = vmatpush3.bf16.msra.mxu0 %v1454_v59 }
  0x45   :  { %1066 = vmatprep.subr.bf16.mxu1 %v1282_v0  ;;  %1138 = vmatprep.subr.bf16.mxu0 %v1282_v0 }
  0x48   :  { %1068 = vmatpush3.bf16.msra.mxu1 %v1476_v8  ;;  %1140 = vmatpush3.bf16.msra.mxu0 %v1476_v8 }
  0x49   :  { %1069 = vmatprep.subr.bf16.mxu1 %v1282_v0  ;;  %1141 = vmatprep.subr.bf16.mxu0 %v1282_v0 }
  0x4b   :  { %868 = vmatmul.mubr.f32.vlgmr.msra.gmra.mrb[0].mxu1 %v157_v16  ;;  %973 = vmatmul.mubr.f32.vlgmr.msra.gmra.mrb[0].mxu0 %v155_v57  ;;  %v1148_v57 = vpack.c.bf16 %v201_v7, %v194_v6  ;;  %v231_v6 = vand.u32 4294901760, %v230_v61  ;;  %v250_v7 = vand.u32 4294901760, %v1515_v33  ;;  %v264_v16 = vand.u32 4294901760, %v1535_v50 }
  0x4c   :  { %1071 = vmatpush3.bf16.msra.mxu1 %v1070_v17  ;;  %1143 = vmatpush3.bf16.msra.mxu0 %v1142_v15  ;;  %v244_v15 = vsub.f32 %v1504_v27, %v243_v42  ;;  %v238_v17 = vand.u32 4294901760, %v237_v10 }
  0x4d   :  { %1072 = vmatprep.subr.bf16.mxu1 %v1282_v0  ;;  %1144 = vmatprep.subr.bf16.mxu0 %v1282_v0  ;;  %v1082_v52 = vpack.c.bf16 %v231_v6, %v224_v5  ;;  %v251_v60 = vsub.f32 %v1515_v33, %v250_v7  ;;  %v265_v30 = vsub.f32 %v1535_v50, %v264_v16 }
  0x4e   :  { %902 = vmatprep.mubr.msk.f32.mxu1 %vm1283_vm0, %v1284_v1  ;;  %1007 = vmatprep.mubr.msk.f32.mxu0 %vm1283_vm0, %v1284_v1  ;;  %v245_v19 = vand.u32 4294901760, %v244_v15  ;;  %v1160_v43 = vpack.c.bf16 %v257_v51, %v250_v7 }
  0x4f   :  { %v252_v26 = vand.u32 4294901760, %v251_v60 }
  0x50   :  { %1074 = vmatpush3.bf16.msra.mxu1 %v1073_v46  ;;  %1146 = vmatpush3.bf16.msra.mxu0 %v1145_v28  ;;  %v1085_v24 = vpack.c.bf16 %v245_v19, %v238_v17  ;;  %v259_v28 = vand.u32 4294901760, %v258_v21  ;;  %v266_v46 = vand.u32 4294901760, %v265_v30 }
  0x51   :  { %1075 = vmatprep.subr.bf16.mxu1 %v1282_v0  ;;  %1147 = vmatprep.subr.bf16.mxu0 %v1282_v0 }
  0x52   :  { %v1088_v34 = vpack.c.bf16 %v259_v28, %v252_v26  ;;  %v1091_v39 = vpack.c.bf16 %v273_v32, %v266_v46 }
  0x54   :  { %1077 = vmatpush3.bf16.msra.mxu1 %v1076_v54  ;;  %1149 = vmatpush3.bf16.msra.mxu0 %v1148_v57  ;;  %v1163_v54 = vpack.c.bf16 %v271_v22, %v264_v16  ;;  %v1094_v57 = vpack.c.bf16 %v1397_v36, %v1395_v35  ;;  %v1100_v35 = vpack.c.bf16 %v1443_v55, %v1439_v53 }
  0x55   :  { %1078 = vmatprep.subr.bf16.mxu1 %v1282_v0  ;;  %1150 = vmatprep.subr.bf16.mxu0 %v1282_v0 }
  0x58   :  { %1080 = vmatpush3.bf16.msra.mxu1 %v1079_v9  ;;  %1152 = vmatpush3.bf16.msra.mxu0 %v1151_v4 }
  0x59   :  { %1081 = vmatprep.subr.bf16.mxu1 %v1282_v0  ;;  %1153 = vmatprep.subr.bf16.mxu0 %v1282_v0 }
  0x5c   :  { %1083 = vmatpush3.bf16.msra.mxu1 %v1082_v52  ;;  %1155 = vmatpush3.bf16.msra.mxu0 %v1154_v56 }
  0x5d   :  { %1084 = vmatprep.subr.bf16.mxu1 %v1282_v0  ;;  %1156 = vmatprep.subr.bf16.mxu0 %v1282_v0 }
  0x60   :  { %1086 = vmatpush3.bf16.msra.mxu1 %v1085_v24  ;;  %1158 = vmatpush3.bf16.msra.mxu0 %v1157_v23 }
  0x61   :  { %1087 = vmatprep.subr.bf16.mxu1 %v1282_v0  ;;  %1159 = vmatprep.subr.bf16.mxu0 %v1282_v0 }
  0x64   :  { %1089 = vmatpush3.bf16.msra.mxu1 %v1088_v34  ;;  %1161 = vmatpush3.bf16.msra.mxu0 %v1160_v43 }
  0x65   :  { %1090 = vmatprep.subr.bf16.mxu1 %v1282_v0  ;;  %1162 = vmatprep.subr.bf16.mxu0 %v1282_v0 }
  0x68   :  { %1092 = vmatpush3.bf16.msra.mxu1 %v1091_v39  ;;  %1164 = vmatpush3.bf16.msra.mxu0 %v1163_v54 }
  0x69   :  { %1093 = vmatprep.subr.bf16.mxu1 %v1282_v0  ;;  %1165 = vmatprep.subr.bf16.mxu0 %v1282_v0 }
  0x6b   :  { %903 = vmatmul.mubr.f32.vlgmr.msra.gmra.mrb[0].mxu1 %v1399_v37  ;;  %1008 = vmatmul.mubr.f32.vlgmr.msra.gmra.mrb[0].mxu0 %v1399_v37 }
  0x6c   :  { %1095 = vmatpush3.bf16.msra.mxu1 %v1094_v57  ;;  %1167 = vmatpush3.bf16.msra.mxu0 %v1347_v12  ;;  %v1103_v12 = vpack.c.bf16 %v1465_v2, %v1462_v63 }
  0x6d   :  { %1096 = vmatprep.subr.bf16.mxu1 %v1282_v0  ;;  %1168 = vmatprep.subr.bf16.mxu0 %v1282_v0 }
  0x6e   :  { %937 = vmatprep.mubr.msk.f32.mxu1 %vm1283_vm0, %v1284_v1  ;;  %1042 = vmatprep.mubr.msk.f32.mxu0 %vm1283_vm0, %v1284_v1  ;;  %v1106_v1 = vpack.c.bf16 %v1486_v14, %v1483_v11 }
  0x70   :  { %1098 = vmatpush3.bf16.msra.mxu1 %v1097_v58  ;;  %1170 = vmatpush3.bf16.msra.mxu0 %v1351_v13  ;;  %v1109_v13 = vpack.c.bf16 %v1504_v27, %v1499_v25 }
  0x71   :  { %1099 = vmatprep.subr.bf16.mxu1 %v1282_v0  ;;  %1171 = vmatprep.subr.bf16.mxu0 %v1282_v0 }
  0x74   :  { %1101 = vmatpush3.bf16.msra.mxu1 %v1100_v35  ;;  %1173 = vmatpush3.bf16.msra.mxu0 %v1368_v20  ;;  %v1112_v20 = vpack.c.bf16 %v1520_v40, %v1515_v33 }
  0x75   :  { %1102 = vmatprep.subr.bf16.mxu1 %v1282_v0  ;;  %1174 = vmatprep.subr.bf16.mxu0 %v1282_v0 }
  0x78   :  { %1104 = vmatpush3.bf16.msra.mxu1 %v1103_v12  ;;  %1176 = vmatpush3.bf16.msra.mxu0 %v1385_v29  ;;  %v1115_v29 = vpack.c.bf16 %v1540_v3, %v1535_v50 }
  0x79   :  { %1105 = vmatprep.subr.bf16.mxu1 %v1282_v0  ;;  %1177 = vmatprep.subr.bf16.mxu0 %v1282_v0 }
  0x7c   :  { %1107 = vmatpush3.bf16.msra.mxu1 %v1106_v1  ;;  %1179 = vmatpush3.bf16.msra.mxu0 %v1403_v38 }
  0x7d   :  { %1108 = vmatprep.subr.bf16.mxu1 %v1282_v0  ;;  %1180 = vmatprep.subr.bf16.mxu0 %v1282_v0 }
  0x80   :  { %1110 = vmatpush3.bf16.msra.mxu1 %v1109_v13  ;;  %1182 = vmatpush3.bf16.msra.mxu0 %v1428_v48 }
  0x81   :  { %1111 = vmatprep.subr.bf16.mxu1 %v1282_v0  ;;  %1183 = vmatprep.subr.bf16.mxu0 %v1282_v0 }
  0x84   :  { %1113 = vmatpush3.bf16.msra.mxu1 %v1112_v20  ;;  %1185 = vmatpush3.bf16.msra.mxu0 %v1454_v59 }
  0x85   :  { %1114 = vmatprep.subr.bf16.mxu1 %v1282_v0  ;;  %1186 = vmatprep.subr.bf16.mxu0 %v1282_v0 }
  0x88   :  { %1116 = vmatpush3.bf16.msra.mxu1 %v1115_v29  ;;  %1188 = vmatpush3.bf16.msra.mxu0 %v1476_v8 }
  0x8b   :  { %938 = vmatmul.mubr.f32.vlgmr.msra.gmra.mrb[0].mxu1 %v1417_v45  ;;  %1043 = vmatmul.mubr.f32.vlgmr.msra.gmra.mrb[0].mxu0 %v1399_v37 }
 0x15e   :  { %v414_v36 = vpop.f32.mrb[0].mxu1  ;;  %v709_v38 = vpop.f32.mrb[0].mxu0 }
 0x15f   :  { %v1189_v44 = vadd.f32 %v709_v38, %v414_v36  ;;  %v939_v47 = vpop.f32.mrb[1].mxu1  ;;  %v1044_v48 = vpop.f32.mrb[1].mxu0 }
 0x161   :  { %v713_v53 = vmul.f32 %v1189_v44, %v1361_v18 }
 0x163   :  { %714 = vst [vmem:[#allocation7] sm:$0x3] %v713_v53 }
 0x164   :  { %1261 = shalt.err (!%p1258_p6)
}
 0x165   :  { %s1262_s17 = scalar_lea.hbm %s1626_s3, 32 }
 0x166   :  { %p1263_p7 = scmp.ne.s32.totalorder %s1626_s3, %s1262_s17  ;;  %p1266_p8 = scmp.lt.u32.totalorder %s1262_s17, %s1626_s3 }
 0x168   :  { %p1268_p9 = pnand %p1266_p8, %p1263_p7 }
 0x16a   :  { %1271 = shalt.err (!%p1268_p9)
}
 0x16b   :  { %724 = dma.vmem_to_hbm [thread:$0]  %s722_s13, 32, %s1626_s3, [#allocation4]  }
 0x16c   :  { %1276 = dma.done.wait [#allocation4], 32  }
 0x16d   :  { %1277 = vsyncadd [#allocation4], 4294967264 }
 0x16e   :  { %728 = vsyncpa [#allocation3], 1 }
 0x16f   :  { %729 = vsyncpa [#allocation6], 1 }
 0x170   :  { %730 = vsyncpa [#allocation4], 1 }

</bundles_post_ra>
